<compile_context>
chip_gen: v7x
topology: tpu7x:2x2x1
jax: 0.10.0
libtpu: 0.0.40
codegen_flags: <defaults>
</compile_context>

<pallas_src>
import functools

import jax
import jax.numpy as jnp
from jax.experimental import pallas as pl
from jax.experimental.pallas import tpu as pltpu


def _attention_kernel(x_ref, wqv_ref, wkT_ref, wo_ref, o_ref, o_sc, *,
                      batch, seq, heads, dim_head):
    inner = heads * dim_head

    x = x_ref[...]                                       # (B*N, D), input dtype
    xb = x.astype(jnp.bfloat16)

    # One fused projection for q (softmax scale already folded into Wq) and v.
    qv = jnp.dot(xb, wqv_ref[...],
                 preferred_element_type=jnp.float32)     # (B*N, 2*inner)
    q_all = qv[:, :inner]                                # (B*N, inner) f32
    v_all = qv[:, inner:]                                # (B*N, inner) f32

    # batch / heads are small and static -> unrolled Python loops.
    for b in range(batch):
        rows = slice(b * seq, (b + 1) * seq)
        # K^T for this batch in MXU-native layout: (inner, N) = WkT @ x_b^T.
        # One (N, D) transpose per batch instead of one K relayout per head.
        xT_b = x[rows, :].T.astype(jnp.bfloat16)         # (D, N)
        kT_b = jnp.dot(wkT_ref[...], xT_b,
                       preferred_element_type=jnp.float32
                       ).astype(jnp.bfloat16)            # (inner, N)

        for h in range(heads):
            cols = slice(h * dim_head, (h + 1) * dim_head)
            q = q_all[rows, cols].astype(jnp.bfloat16)   # (N, dh)
            v = v_all[rows, cols].astype(jnp.bfloat16)   # (N, dh)
            kT = kT_b[cols, :]                           # (dh, N)

            s = jnp.dot(q, kT,
                        preferred_element_type=jnp.float32)   # (N, N) f32
            m = jnp.max(s, axis=-1, keepdims=True)
            p = jnp.exp(s - m)
            l = jnp.sum(p, axis=-1, keepdims=True)
            inv_l = pl.reciprocal(l, approx=True)        # EUP, not VALU divide

            if seq <= dim_head:
                # normalize the smaller (N, N) operand
                p = p * inv_l
                o = jnp.dot(p.astype(jnp.bfloat16), v,
                            preferred_element_type=jnp.float32)   # (N, dh)
            else:
                # normalize the smaller (N, dh) result instead
                o = jnp.dot(p.astype(jnp.bfloat16), v,
                            preferred_element_type=jnp.float32)
                o = o * inv_l

            # Write head output into the bf16 scratch at static offsets
            # (replaces the f32 concatenate + cast).
            o_sc[rows, cols] = o.astype(jnp.bfloat16)

    # Single output-projection matmul for all batches/heads.
    out = jnp.dot(o_sc[...], wo_ref[...],
                  preferred_element_type=jnp.float32)    # (B*N, D)
    o_ref[...] = out.astype(o_ref.dtype)


def attention_pallas(x, wq, wkv, wo, *, heads, dim_head):
    """x: [B, N, D]; wq: [D, H*dh]; wkv: [D, 2*H*dh]; wo: [H*dh, D]."""
    B, N, D = x.shape
    inner = heads * dim_head
    assert wq.shape == (D, inner)
    assert wkv.shape == (D, 2 * inner)
    assert wo.shape == (inner, D)
    scale = dim_head ** (-0.5)

    # Weight prep, fused with the one-time bf16 cast (outside the kernel):
    #  * softmax scale folded into Wq (zero extra cost)
    #  * Wq|Wv fused into a single (D, 2*inner) projection weight
    #  * Wk stored pre-transposed so K^T leaves the MXU in native layout
    wk = wkv[:, :inner]
    wv = wkv[:, inner:]
    wqv = jnp.concatenate([wq * scale, wv], axis=-1).astype(jnp.bfloat16)  # (D, 2*inner)
    wkT = wk.T.astype(jnp.bfloat16)                                        # (inner, D)
    wo_b = wo.astype(jnp.bfloat16)                                         # (inner, D)

    # Fold batch into the row dimension: projections are batch-independent.
    x2 = x.reshape(B * N, D)

    kernel = functools.partial(_attention_kernel, batch=B, seq=N,
                               heads=heads, dim_head=dim_head)

    grid_spec = pltpu.PrefetchScalarGridSpec(
        num_scalar_prefetch=0,
        grid=(1,),  # whole problem in one step at these shapes
        in_specs=[
            pl.BlockSpec((B * N, D), lambda i: (0, 0)),        # x (all batches)
            pl.BlockSpec((D, 2 * inner), lambda i: (0, 0)),    # Wq*scale | Wv
            pl.BlockSpec((inner, D), lambda i: (0, 0)),        # Wk^T
            pl.BlockSpec((inner, D), lambda i: (0, 0)),        # Wout
        ],
        out_specs=pl.BlockSpec((B * N, D), lambda i: (0, 0)),
        scratch_shapes=[pltpu.VMEM((B * N, inner), jnp.bfloat16)],
    )

    out = pl.pallas_call(
        kernel,
        out_shape=jax.ShapeDtypeStruct((B * N, D), x.dtype),
        grid_spec=grid_spec,
        compiler_params=pltpu.CompilerParams(
            dimension_semantics=("arbitrary",)),
    )(x2, wqv, wkT, wo_b)
    return out.reshape(B, N, D)


def attention_reference(x, wq, wkv, wo, *, heads, dim_head):
    """Pure-JAX f32 reference matching the PyTorch forward (context=None)."""
    B, N, D = x.shape
    H, dh = heads, dim_head
    inner = H * dh
    q = x @ wq
    kv = x @ wkv
    k, v = kv[..., :inner], kv[..., inner:]

    def split_heads(t):  # b n (h d) -> b h n d
        return t.reshape(B, N, H, dh).transpose(0, 2, 1, 3)

    qh, kh, vh = map(split_heads, (q, k, v))
    s = jnp.einsum('bhnd,bhmd->bhnm', qh, kh) * (dh ** -0.5)
    p = jax.nn.softmax(s, axis=-1)
    o = jnp.einsum('bhnm,bhmd->bhnd', p, vh)
    o = o.transpose(0, 2, 1, 3).reshape(B, N, inner)
    return o @ wo


if __name__ == "__main__":
    # Small, lane-dense shapes: query_dim=128, heads=2, dim_head=128.
    B, N, D = 2, 8, 128
    H, dh = 2, 128
    inner = H * dh

    key = jax.random.PRNGKey(0)
    kx, kq, kkv, ko = jax.random.split(key, 4)
    x = jax.random.normal(kx, (B, N, D), dtype=jnp.float32)
    # deterministic "weights" (transpose-of-nn.Linear layout, bias=False)
    wq = jax.random.normal(kq, (D, inner), dtype=jnp.float32) * 0.05
    wkv = jax.random.normal(kkv, (D, 2 * inner), dtype=jnp.float32) * 0.05
    wo = jax.random.normal(ko, (inner, D), dtype=jnp.float32) * 0.05

    out = attention_pallas(x, wq, wkv, wo, heads=H, dim_head=dh)
    out = jax.block_until_ready(out)

    ref = attention_reference(x, wq, wkv, wo, heads=H, dim_head=dh)
    assert out.shape == (B, N, D)
    # bf16 matmul operands + approx reciprocal -> loosened tolerance vs f32 ref
    assert jnp.allclose(out, ref, atol=5e-2, rtol=5e-2), float(
        jnp.max(jnp.abs(out - ref)))

    print("KERNEL_OK")
</pallas_src>

<mosaic_0001>
module attributes {stable_mosaic.version = 11 : i64} {
  func.func @_attention_kernel(%arg0: i32, %arg1: memref<16x128xf32, #tpu.memory_space<vmem>>, %arg2: memref<128x512xbf16, #tpu.memory_space<vmem>>, %arg3: memref<256x128xbf16, #tpu.memory_space<vmem>>, %arg4: memref<256x128xbf16, #tpu.memory_space<vmem>>, %arg5: memref<16x128xf32, #tpu.memory_space<vmem>>, %arg6: memref<16x256xbf16, #tpu.memory_space<vmem>>) attributes {dimension_semantics = [#tpu.dimension_semantics<arbitrary>], iteration_bounds = array<i64: 1>, scalar_prefetch = 0 : i64, scratch_operands = 1 : i64, tpu.core_type = #tpu.core_type<tc>, window_params = [{pipeline_mode = #tpu.pipeline_mode<synchronous>, transform_indices = @transform_0, window_bounds = array<i64: 16, 128>}, {pipeline_mode = #tpu.pipeline_mode<synchronous>, transform_indices = @transform_1, window_bounds = array<i64: 128, 512>}, {pipeline_mode = #tpu.pipeline_mode<synchronous>, transform_indices = @transform_2, window_bounds = array<i64: 256, 128>}, {pipeline_mode = #tpu.pipeline_mode<synchronous>, transform_indices = @transform_3, window_bounds = array<i64: 256, 128>}, {pipeline_mode = #tpu.pipeline_mode<synchronous>, transform_indices = @transform_4, window_bounds = array<i64: 16, 128>}]} {
    %c0 = arith.constant 0 : index
    %c0_0 = arith.constant 0 : index
    %0 = vector.load %arg1[%c0, %c0_0] : memref<16x128xf32, #tpu.memory_space<vmem>>, vector<16x128xf32>
    %1 = arith.truncf %0 : vector<16x128xf32> to vector<16x128xbf16>
    %c0_1 = arith.constant 0 : index
    %c0_2 = arith.constant 0 : index
    %2 = vector.load %arg2[%c0_1, %c0_2] : memref<128x512xbf16, #tpu.memory_space<vmem>>, vector<128x512xbf16>
    %cst = arith.constant dense<0.000000e+00> : vector<16x512xf32>
    %3 = tpu.matmul %1, %2, %cst {dimension_numbers = #tpu.dot_dimension_numbers<[1], [0], [0], [1], [0, 0, 1, 1], [], []>} : vector<16x128xbf16>, vector<128x512xbf16>, vector<16x512xf32> -> vector<16x512xf32>
    %4 = vector.extract_strided_slice %3 {offsets = [0, 0], sizes = [16, 256], strides = [1, 1]} : vector<16x512xf32> to vector<16x256xf32>
    %5 = vector.extract_strided_slice %3 {offsets = [0, 256], sizes = [16, 256], strides = [1, 1]} : vector<16x512xf32> to vector<16x256xf32>
    %6 = vector.extract_strided_slice %0 {offsets = [0, 0], sizes = [8, 128], strides = [1, 1]} : vector<16x128xf32> to vector<8x128xf32>
    %7 = tpu.transpose %6, [1, 0] : vector<8x128xf32> -> vector<128x8xf32>
    %8 = arith.truncf %7 : vector<128x8xf32> to vector<128x8xbf16>
    %c0_3 = arith.constant 0 : index
    %c0_4 = arith.constant 0 : index
    %9 = vector.load %arg3[%c0_3, %c0_4] : memref<256x128xbf16, #tpu.memory_space<vmem>>, vector<256x128xbf16>
    %cst_5 = arith.constant dense<0.000000e+00> : vector<256x8xf32>
    %10 = tpu.matmul %9, %8, %cst_5 {dimension_numbers = #tpu.dot_dimension_numbers<[1], [0], [0], [1], [0, 0, 1, 1], [], []>} : vector<256x128xbf16>, vector<128x8xbf16>, vector<256x8xf32> -> vector<256x8xf32>
    %11 = arith.truncf %10 : vector<256x8xf32> to vector<256x8xbf16>
    %12 = vector.extract_strided_slice %4 {offsets = [0, 0], sizes = [8, 128], strides = [1, 1]} : vector<16x256xf32> to vector<8x128xf32>
    %13 = arith.truncf %12 : vector<8x128xf32> to vector<8x128xbf16>
    %14 = vector.extract_strided_slice %5 {offsets = [0, 0], sizes = [8, 128], strides = [1, 1]} : vector<16x256xf32> to vector<8x128xf32>
    %15 = arith.truncf %14 : vector<8x128xf32> to vector<8x128xbf16>
    %16 = vector.extract_strided_slice %11 {offsets = [0, 0], sizes = [128, 8], strides = [1, 1]} : vector<256x8xbf16> to vector<128x8xbf16>
    %cst_6 = arith.constant dense<0.000000e+00> : vector<8x8xf32>
    %17 = tpu.matmul %13, %16, %cst_6 {dimension_numbers = #tpu.dot_dimension_numbers<[1], [0], [0], [1], [0, 0, 1, 1], [], []>} : vector<8x128xbf16>, vector<128x8xbf16>, vector<8x8xf32> -> vector<8x8xf32>
    %cst_7 = arith.constant dense<0xFF800000> : vector<8xf32>
    %18 = vector.multi_reduction <maximumf>, %17, %cst_7 [1] : vector<8x8xf32> to vector<8xf32>
    %19 = vector.shape_cast %18 : vector<8xf32> to vector<8x1xf32>
    %20 = vector.broadcast %19 : vector<8x1xf32> to vector<8x8xf32>
    %21 = arith.subf %17, %20 : vector<8x8xf32>
    %22 = math.exp %21 : vector<8x8xf32>
    %cst_8 = arith.constant dense<0.000000e+00> : vector<8xf32>
    %23 = vector.multi_reduction <add>, %22, %cst_8 [1] : vector<8x8xf32> to vector<8xf32>
    %24 = vector.shape_cast %23 : vector<8xf32> to vector<8x1xf32>
    %25 = tpu.reciprocal %24 {approx = true} : vector<8x1xf32> -> vector<8x1xf32>
    %26 = vector.broadcast %25 : vector<8x1xf32> to vector<8x8xf32>
    %27 = arith.mulf %22, %26 : vector<8x8xf32>
    %28 = arith.truncf %27 : vector<8x8xf32> to vector<8x8xbf16>
    %cst_9 = arith.constant dense<0.000000e+00> : vector<8x128xf32>
    %29 = tpu.matmul %28, %15, %cst_9 {dimension_numbers = #tpu.dot_dimension_numbers<[1], [0], [0], [1], [0, 0, 1, 1], [], []>} : vector<8x8xbf16>, vector<8x128xbf16>, vector<8x128xf32> -> vector<8x128xf32>
    %30 = arith.truncf %29 : vector<8x128xf32> to vector<8x128xbf16>
    %c0_10 = arith.constant 0 : index
    %c0_11 = arith.constant 0 : index
    %31 = vector.load %arg6[%c0_10, %c0_11] : memref<16x256xbf16, #tpu.memory_space<vmem>>, vector<8x128xbf16>
    tpu.vector_store %arg6[%c0_10, %c0_11], %30 {strides = array<i32>} : memref<16x256xbf16, #tpu.memory_space<vmem>>, vector<8x128xbf16>,
    %32 = vector.extract_strided_slice %4 {offsets = [0, 128], sizes = [8, 128], strides = [1, 1]} : vector<16x256xf32> to vector<8x128xf32>
    %33 = arith.truncf %32 : vector<8x128xf32> to vector<8x128xbf16>
    %34 = vector.extract_strided_slice %5 {offsets = [0, 128], sizes = [8, 128], strides = [1, 1]} : vector<16x256xf32> to vector<8x128xf32>
    %35 = arith.truncf %34 : vector<8x128xf32> to vector<8x128xbf16>
    %36 = vector.extract_strided_slice %11 {offsets = [128, 0], sizes = [128, 8], strides = [1, 1]} : vector<256x8xbf16> to vector<128x8xbf16>
    %cst_12 = arith.constant dense<0.000000e+00> : vector<8x8xf32>
    %37 = tpu.matmul %33, %36, %cst_12 {dimension_numbers = #tpu.dot_dimension_numbers<[1], [0], [0], [1], [0, 0, 1, 1], [], []>} : vector<8x128xbf16>, vector<128x8xbf16>, vector<8x8xf32> -> vector<8x8xf32>
    %cst_13 = arith.constant dense<0xFF800000> : vector<8xf32>
    %38 = vector.multi_reduction <maximumf>, %37, %cst_13 [1] : vector<8x8xf32> to vector<8xf32>
    %39 = vector.shape_cast %38 : vector<8xf32> to vector<8x1xf32>
    %40 = vector.broadcast %39 : vector<8x1xf32> to vector<8x8xf32>
    %41 = arith.subf %37, %40 : vector<8x8xf32>
    %42 = math.exp %41 : vector<8x8xf32>
    %cst_14 = arith.constant dense<0.000000e+00> : vector<8xf32>
    %43 = vector.multi_reduction <add>, %42, %cst_14 [1] : vector<8x8xf32> to vector<8xf32>
    %44 = vector.shape_cast %43 : vector<8xf32> to vector<8x1xf32>
    %45 = tpu.reciprocal %44 {approx = true} : vector<8x1xf32> -> vector<8x1xf32>
    %46 = vector.broadcast %45 : vector<8x1xf32> to vector<8x8xf32>
    %47 = arith.mulf %42, %46 : vector<8x8xf32>
    %48 = arith.truncf %47 : vector<8x8xf32> to vector<8x8xbf16>
    %cst_15 = arith.constant dense<0.000000e+00> : vector<8x128xf32>
    %49 = tpu.matmul %48, %35, %cst_15 {dimension_numbers = #tpu.dot_dimension_numbers<[1], [0], [0], [1], [0, 0, 1, 1], [], []>} : vector<8x8xbf16>, vector<8x128xbf16>, vector<8x128xf32> -> vector<8x128xf32>
    %50 = arith.truncf %49 : vector<8x128xf32> to vector<8x128xbf16>
    %c0_16 = arith.constant 0 : index
    %c128 = arith.constant 128 : index
    %51 = vector.load %arg6[%c0_16, %c128] : memref<16x256xbf16, #tpu.memory_space<vmem>>, vector<8x128xbf16>
    tpu.vector_store %arg6[%c0_16, %c128], %50 {strides = array<i32>} : memref<16x256xbf16, #tpu.memory_space<vmem>>, vector<8x128xbf16>,
    %52 = vector.extract_strided_slice %0 {offsets = [8, 0], sizes = [8, 128], strides = [1, 1]} : vector<16x128xf32> to vector<8x128xf32>
    %53 = tpu.transpose %52, [1, 0] : vector<8x128xf32> -> vector<128x8xf32>
    %54 = arith.truncf %53 : vector<128x8xf32> to vector<128x8xbf16>
    %c0_17 = arith.constant 0 : index
    %c0_18 = arith.constant 0 : index
    %55 = vector.load %arg3[%c0_17, %c0_18] : memref<256x128xbf16, #tpu.memory_space<vmem>>, vector<256x128xbf16>
    %cst_19 = arith.constant dense<0.000000e+00> : vector<256x8xf32>
    %56 = tpu.matmul %55, %54, %cst_19 {dimension_numbers = #tpu.dot_dimension_numbers<[1], [0], [0], [1], [0, 0, 1, 1], [], []>} : vector<256x128xbf16>, vector<128x8xbf16>, vector<256x8xf32> -> vector<256x8xf32>
    %57 = arith.truncf %56 : vector<256x8xf32> to vector<256x8xbf16>
    %58 = vector.extract_strided_slice %4 {offsets = [8, 0], sizes = [8, 128], strides = [1, 1]} : vector<16x256xf32> to vector<8x128xf32>
    %59 = arith.truncf %58 : vector<8x128xf32> to vector<8x128xbf16>
    %60 = vector.extract_strided_slice %5 {offsets = [8, 0], sizes = [8, 128], strides = [1, 1]} : vector<16x256xf32> to vector<8x128xf32>
    %61 = arith.truncf %60 : vector<8x128xf32> to vector<8x128xbf16>
    %62 = vector.extract_strided_slice %57 {offsets = [0, 0], sizes = [128, 8], strides = [1, 1]} : vector<256x8xbf16> to vector<128x8xbf16>
    %cst_20 = arith.constant dense<0.000000e+00> : vector<8x8xf32>
    %63 = tpu.matmul %59, %62, %cst_20 {dimension_numbers = #tpu.dot_dimension_numbers<[1], [0], [0], [1], [0, 0, 1, 1], [], []>} : vector<8x128xbf16>, vector<128x8xbf16>, vector<8x8xf32> -> vector<8x8xf32>
    %cst_21 = arith.constant dense<0xFF800000> : vector<8xf32>
    %64 = vector.multi_reduction <maximumf>, %63, %cst_21 [1] : vector<8x8xf32> to vector<8xf32>
    %65 = vector.shape_cast %64 : vector<8xf32> to vector<8x1xf32>
    %66 = vector.broadcast %65 : vector<8x1xf32> to vector<8x8xf32>
    %67 = arith.subf %63, %66 : vector<8x8xf32>
    %68 = math.exp %67 : vector<8x8xf32>
    %cst_22 = arith.constant dense<0.000000e+00> : vector<8xf32>
    %69 = vector.multi_reduction <add>, %68, %cst_22 [1] : vector<8x8xf32> to vector<8xf32>
    %70 = vector.shape_cast %69 : vector<8xf32> to vector<8x1xf32>
    %71 = tpu.reciprocal %70 {approx = true} : vector<8x1xf32> -> vector<8x1xf32>
    %72 = vector.broadcast %71 : vector<8x1xf32> to vector<8x8xf32>
    %73 = arith.mulf %68, %72 : vector<8x8xf32>
    %74 = arith.truncf %73 : vector<8x8xf32> to vector<8x8xbf16>
    %cst_23 = arith.constant dense<0.000000e+00> : vector<8x128xf32>
    %75 = tpu.matmul %74, %61, %cst_23 {dimension_numbers = #tpu.dot_dimension_numbers<[1], [0], [0], [1], [0, 0, 1, 1], [], []>} : vector<8x8xbf16>, vector<8x128xbf16>, vector<8x128xf32> -> vector<8x128xf32>
    %76 = arith.truncf %75 : vector<8x128xf32> to vector<8x128xbf16>
    %c8 = arith.constant 8 : index
    %c0_24 = arith.constant 0 : index
    %77 = vector.load %arg6[%c8, %c0_24] : memref<16x256xbf16, #tpu.memory_space<vmem>>, vector<8x128xbf16>
    tpu.vector_store %arg6[%c8, %c0_24], %76 {strides = array<i32>} : memref<16x256xbf16, #tpu.memory_space<vmem>>, vector<8x128xbf16>,
    %78 = vector.extract_strided_slice %4 {offsets = [8, 128], sizes = [8, 128], strides = [1, 1]} : vector<16x256xf32> to vector<8x128xf32>
    %79 = arith.truncf %78 : vector<8x128xf32> to vector<8x128xbf16>
    %80 = vector.extract_strided_slice %5 {offsets = [8, 128], sizes = [8, 128], strides = [1, 1]} : vector<16x256xf32> to vector<8x128xf32>
    %81 = arith.truncf %80 : vector<8x128xf32> to vector<8x128xbf16>
    %82 = vector.extract_strided_slice %57 {offsets = [128, 0], sizes = [128, 8], strides = [1, 1]} : vector<256x8xbf16> to vector<128x8xbf16>
    %cst_25 = arith.constant dense<0.000000e+00> : vector<8x8xf32>
    %83 = tpu.matmul %79, %82, %cst_25 {dimension_numbers = #tpu.dot_dimension_numbers<[1], [0], [0], [1], [0, 0, 1, 1], [], []>} : vector<8x128xbf16>, vector<128x8xbf16>, vector<8x8xf32> -> vector<8x8xf32>
    %cst_26 = arith.constant dense<0xFF800000> : vector<8xf32>
    %84 = vector.multi_reduction <maximumf>, %83, %cst_26 [1] : vector<8x8xf32> to vector<8xf32>
    %85 = vector.shape_cast %84 : vector<8xf32> to vector<8x1xf32>
    %86 = vector.broadcast %85 : vector<8x1xf32> to vector<8x8xf32>
    %87 = arith.subf %83, %86 : vector<8x8xf32>
    %88 = math.exp %87 : vector<8x8xf32>
    %cst_27 = arith.constant dense<0.000000e+00> : vector<8xf32>
    %89 = vector.multi_reduction <add>, %88, %cst_27 [1] : vector<8x8xf32> to vector<8xf32>
    %90 = vector.shape_cast %89 : vector<8xf32> to vector<8x1xf32>
    %91 = tpu.reciprocal %90 {approx = true} : vector<8x1xf32> -> vector<8x1xf32>
    %92 = vector.broadcast %91 : vector<8x1xf32> to vector<8x8xf32>
    %93 = arith.mulf %88, %92 : vector<8x8xf32>
    %94 = arith.truncf %93 : vector<8x8xf32> to vector<8x8xbf16>
    %cst_28 = arith.constant dense<0.000000e+00> : vector<8x128xf32>
    %95 = tpu.matmul %94, %81, %cst_28 {dimension_numbers = #tpu.dot_dimension_numbers<[1], [0], [0], [1], [0, 0, 1, 1], [], []>} : vector<8x8xbf16>, vector<8x128xbf16>, vector<8x128xf32> -> vector<8x128xf32>
    %96 = arith.truncf %95 : vector<8x128xf32> to vector<8x128xbf16>
    %c8_29 = arith.constant 8 : index
    %c128_30 = arith.constant 128 : index
    %97 = vector.load %arg6[%c8_29, %c128_30] : memref<16x256xbf16, #tpu.memory_space<vmem>>, vector<8x128xbf16>
    tpu.vector_store %arg6[%c8_29, %c128_30], %96 {strides = array<i32>} : memref<16x256xbf16, #tpu.memory_space<vmem>>, vector<8x128xbf16>,
    %c0_31 = arith.constant 0 : index
    %c0_32 = arith.constant 0 : index
    %98 = vector.load %arg6[%c0_31, %c0_32] : memref<16x256xbf16, #tpu.memory_space<vmem>>, vector<16x256xbf16>
    %c0_33 = arith.constant 0 : index
    %c0_34 = arith.constant 0 : index
    %99 = vector.load %arg4[%c0_33, %c0_34] : memref<256x128xbf16, #tpu.memory_space<vmem>>, vector<256x128xbf16>
    %cst_35 = arith.constant dense<0.000000e+00> : vector<16x128xf32>
    %100 = tpu.matmul %98, %99, %cst_35 {dimension_numbers = #tpu.dot_dimension_numbers<[1], [0], [0], [1], [0, 0, 1, 1], [], []>} : vector<16x256xbf16>, vector<256x128xbf16>, vector<16x128xf32> -> vector<16x128xf32>
    %c0_36 = arith.constant 0 : index
    %c0_37 = arith.constant 0 : index
    %101 = vector.load %arg5[%c0_36, %c0_37] : memref<16x128xf32, #tpu.memory_space<vmem>>, vector<16x128xf32>
    tpu.vector_store %arg5[%c0_36, %c0_37], %100 {strides = array<i32>} : memref<16x128xf32, #tpu.memory_space<vmem>>, vector<16x128xf32>,
    return
  }
  func.func @transform_0(%arg0: i32) -> (i32, i32) {
    %c0_i32 = arith.constant 0 : i32
    %c0_i32_0 = arith.constant 0 : i32
    %c0_i32_1 = arith.constant 0 : i32
    return %c0_i32, %c0_i32_0 : i32, i32
  }
  func.func @transform_1(%arg0: i32) -> (i32, i32) {
    %c0_i32 = arith.constant 0 : i32
    %c0_i32_0 = arith.constant 0 : i32
    %c0_i32_1 = arith.constant 0 : i32
    return %c0_i32, %c0_i32_0 : i32, i32
  }
  func.func @transform_2(%arg0: i32) -> (i32, i32) {
    %c0_i32 = arith.constant 0 : i32
    %c0_i32_0 = arith.constant 0 : i32
    %c0_i32_1 = arith.constant 0 : i32
    return %c0_i32, %c0_i32_0 : i32, i32
  }
  func.func @transform_3(%arg0: i32) -> (i32, i32) {
    %c0_i32 = arith.constant 0 : i32
    %c0_i32_0 = arith.constant 0 : i32
    %c0_i32_1 = arith.constant 0 : i32
    return %c0_i32, %c0_i32_0 : i32, i32
  }
  func.func @transform_4(%arg0: i32) -> (i32, i32) {
    %c0_i32 = arith.constant 0 : i32
    %c0_i32_0 = arith.constant 0 : i32
    %c0_i32_1 = arith.constant 0 : i32
    return %c0_i32, %c0_i32_0 : i32, i32
  }
}

</mosaic_0001>

<bundles_post_ra>
// kernel: tpu_custom_call.1
= control target key start
LH: loop header
LB: loop body
LE: loop exit
PB: predicated region body
PF: predicated region fallthrough
CT: control target
= control target key end

     0   :  { %9 = vsyncpa [#allocation4], 0  ;;  %s2641_s0 = inlined_call_operand.hbm [shape: f32[16,128], index: 0, kind: input, shape index: {}]   ;;  %s2642_s1 = inlined_call_operand.hbm [shape: bf16[128,512], index: 1, kind: input, shape index: {}]   ;;  %s2643_s2 = inlined_call_operand.hbm [shape: bf16[256,128], index: 2, kind: input, shape index: {}]   ;;  %s2644_s3 = inlined_call_operand.hbm [shape: bf16[256,128], index: 3, kind: input, shape index: {}]   ;;  %s2645_s4 = inlined_call_operand.hbm [shape: f32[16,128], index: 4, kind: output, shape index: {}]  }
   0x1   :  { %10 = vsyncpa [#allocation7], 0 }
   0x2   :  { %11 = vsyncpa [#allocation10], 0 }
   0x3   :  { %12 = vsyncpa [#allocation5], 0  ;;  %s2295_s15 = smov [#allocation6]   ;;  %s2177_s19 = scalar_lea.hbm %s2642_s1, 4096 }
   0x4   :  { %s30_s16 = sshll.u32 %s2295_s15, 4  ;;  %p2178_p0 = scmp.ne.s32.totalorder %s2642_s1, %s2177_s19  ;;  %s31_s16 = int_to_ptr.vmem [resolvable:$true] %s30_s16 }
   0x5   :  { %p2181_p1 = scmp.lt.u32.totalorder %s2177_s19, %s2642_s1 }
   0x7   :  { %p2183_p2 = pnand %p2181_p1, %p2178_p0 }
   0x9   :  { %2186 = shalt.err (!%p2183_p2)
}
   0xa   :  { %s2187_s24 = scalar_lea.vmem %s31_s16, 4096  ;;  %p2192_p4 = scmp.lt.s32.totalorder %s31_s16, %s31_s16 }
   0xb   :  { %p2188_p3 = scmp.ne.s32.totalorder %s31_s16, %s2187_s24  ;;  %p2193_p5 = scmp.lt.s32.totalorder %s2187_s24, %s2187_s24 }
   0xd   :  { %p2194_p6 = por %p2193_p5, %p2192_p4 }
   0xf   :  { %p2195_p7 = pnand %p2194_p6, %p2188_p3 }
  0x11   :  { %2198 = shalt.err (!%p2195_p7)
}
  0x12   :  { %s2296_s25 = smov 256   ;;  %s2297_s26 = smov 16  }
  0x13   :  { %36 = dma.hbm_to_vmem [thread:$0]  %s2642_s1, 4096, %s31_s16, [#allocation7], %s2296_s25, %s2296_s25, %s2297_s26  }
  0x14   :  { %s2298_s29 = smov [#allocation3]   ;;  %s2199_s7 = scalar_lea.hbm %s2641_s0, 256 }
  0x15   :  { %s18_s30 = sshll.u32 %s2298_s29, 4  ;;  %p2200_p8 = scmp.ne.s32.totalorder %s2641_s0, %s2199_s7  ;;  %s19_s30 = int_to_ptr.vmem [resolvable:$true] %s18_s30 }
  0x16   :  { %p2203_p9 = scmp.lt.u32.totalorder %s2199_s7, %s2641_s0 }
  0x18   :  { %p2205_p10 = pnand %p2203_p9, %p2200_p8 }
  0x1a   :  { %2208 = shalt.err (!%p2205_p10)
}
  0x1b   :  { %s2209_s12 = scalar_lea.vmem %s19_s30, 256  ;;  %p2214_p12 = scmp.lt.s32.totalorder %s19_s30, %s19_s30 }
  0x1c   :  { %p2210_p11 = scmp.ne.s32.totalorder %s19_s30, %s2209_s12  ;;  %p2215_p13 = scmp.lt.s32.totalorder %s2209_s12, %s2209_s12 }
  0x1e   :  { %p2216_p0 = por %p2215_p13, %p2214_p12 }
  0x20   :  { %p2217_p1 = pnand %p2216_p0, %p2210_p11 }
  0x22   :  { %2220 = shalt.err (!%p2217_p1)
}
  0x23   :  { %s2299_s1 = smov 128   ;;  %s2300_s13 = smov 8  }
  0x24   :  { %24 = dma.hbm_to_vmem [thread:$0]  %s2641_s0, 256, %s19_s30, [#allocation4], %s2299_s1, %s2299_s1, %s2300_s13  }
  0x25   :  { %s2301_s16 = smov [#allocation8]   ;;  %s2221_s20 = scalar_lea.hbm %s2643_s2, 2048 }
  0x26   :  { %s42_s17 = sshll.u32 %s2301_s16, 4  ;;  %p2222_p2 = scmp.ne.s32.totalorder %s2643_s2, %s2221_s20  ;;  %s43_s17 = int_to_ptr.vmem [resolvable:$true] %s42_s17 }
  0x27   :  { %p2225_p3 = scmp.lt.u32.totalorder %s2221_s20, %s2643_s2 }
  0x29   :  { %p2227_p4 = pnand %p2225_p3, %p2222_p2 }
  0x2b   :  { %2230 = shalt.err (!%p2227_p4)
}
  0x2c   :  { %s2231_s25 = scalar_lea.vmem %s43_s17, 2048  ;;  %p2236_p6 = scmp.lt.s32.totalorder %s43_s17, %s43_s17 }
  0x2d   :  { %p2232_p5 = scmp.ne.s32.totalorder %s43_s17, %s2231_s25  ;;  %p2237_p7 = scmp.lt.s32.totalorder %s2231_s25, %s2231_s25 }
  0x2f   :  { %p2238_p8 = por %p2237_p7, %p2236_p6 }
  0x31   :  { %p2239_p9 = pnand %p2238_p8, %p2232_p5 }
  0x33   :  { %2242 = shalt.err (!%p2239_p9)
}
  0x34   :  { %s2302_s0 = smov 64   ;;  %s2303_s26 = smov 4  }
  0x35   :  { %48 = dma.hbm_to_vmem [thread:$0]  %s2643_s2, 2048, %s43_s17, [#allocation7], %s2302_s0, %s2302_s0, %s2303_s26  }
  0x36   :  { %s2304_s29 = smov [#allocation9]   ;;  %s2243_s7 = scalar_lea.hbm %s2644_s3, 2048 }
  0x37   :  { %s54_s30 = sshll.u32 %s2304_s29, 4  ;;  %p2244_p10 = scmp.ne.s32.totalorder %s2644_s3, %s2243_s7  ;;  %s55_s30 = int_to_ptr.vmem [resolvable:$true] %s54_s30 }
  0x38   :  { %p2247_p11 = scmp.lt.u32.totalorder %s2243_s7, %s2644_s3 }
  0x3a   :  { %p2249_p12 = pnand %p2247_p11, %p2244_p10 }
  0x3c   :  { %2252 = shalt.err (!%p2249_p12)
}
  0x3d   :  { %s2253_s12 = scalar_lea.vmem %s55_s30, 2048  ;;  %p2258_p0 = scmp.lt.s32.totalorder %s55_s30, %s55_s30 }
  0x3e   :  { %p2254_p13 = scmp.ne.s32.totalorder %s55_s30, %s2253_s12  ;;  %p2259_p1 = scmp.lt.s32.totalorder %s2253_s12, %s2253_s12 }
  0x40   :  { %p2260_p2 = por %p2259_p1, %p2258_p0 }
  0x42   :  { %p2261_p3 = pnand %p2260_p2, %p2254_p13 }
  0x44   :  { %2264 = shalt.err (!%p2261_p3)
}
  0x45   :  { %60 = dma.hbm_to_vmem [thread:$0]  %s2644_s3, 2048, %s55_s30, [#allocation10], %s2302_s0, %s2302_s0, %s2303_s26  }
  0x46   :  { %2287 = dma.done.wait [#allocation4], 256  }
  0x47   :  { %2288 = vsyncadd [#allocation4], 4294967040 }
  0x48   :  { %2289 = dma.done.wait [#allocation7], 6144  }
  0x49   :  { %2290 = vsyncadd [#allocation7], 4294961152 }
  0x4a   :  { %2291 = dma.done.wait [#allocation10], 2048  }
  0x4b   :  { %2292 = vsyncadd [#allocation10], 4294965248  ;;  %v74_v0 = vld [vmem:[#allocation3] sm:$0xff]  ;;  %v2305_v6 = vmov 0   ;;  %v75_v18 = vld [vmem:[#allocation3 + $0x8] sm:$0xff]  ;;  %vm2307_vm0 = vmmov 0  }
  0x4c   :  { %355 = vxpose.xlu0.b32.start.end [1/1] (short) %v74_v0, 128  ;;  %v2065_v1 = vld [vmem:[#allocation6 + $0x4] ss:$16 sps:$4 sm:$0xff]   ;;  %v2067_v2 = vld [vmem:[#allocation6] ss:$16 sps:$4 sm:$0xff]   ;;  %301 = vmatprep.mubr.bf16.mxu0 %v2305_v6  ;;  %v2385_v19 = vpack.c.bf16 %v75_v18, %v74_v0  ;;  %v2113_v31 = vld [vmem:[#allocation6 + $0xc] ss:$16 sps:$4 sm:$0xff]  }
  0x4d   :  { %v2068_v3 = vld [vmem:[#allocation6 + $0x24] ss:$16 sps:$4 sm:$0xff]   ;;  %269 = vmatprep.subr.bf16.mxu0 %v2065_v1  ;;  %v2070_v4 = vld [vmem:[#allocation6 + $0x20] ss:$16 sps:$4 sm:$0xff]   ;;  %344 = vmatprep.mubr.bf16.mxu1 %v2305_v6  ;;  %v2115_v32 = vld [vmem:[#allocation6 + $0x8] ss:$16 sps:$4 sm:$0xff]  }
  0x4e   :  { %270 = vmatpush1.bf16.msra.mxu0 %v2067_v2  ;;  %v2071_v5 = vld [vmem:[#allocation6 + $0x44] ss:$16 sps:$4 sm:$0xff]   ;;  %v2073_v7 = vld [vmem:[#allocation6 + $0x40] ss:$16 sps:$4 sm:$0xff]   ;;  %v2116_v33 = vld [vmem:[#allocation6 + $0x2c] ss:$16 sps:$4 sm:$0xff]   ;;  %312 = vmatprep.subr.bf16.mxu1 %v2113_v31 }
  0x4f   :  { %271 = vmatprep.subr.bf16.mxu0 %v2068_v3  ;;  %v2074_v8 = vld [vmem:[#allocation6 + $0x64] ss:$16 sps:$4 sm:$0xff]   ;;  %v2076_v9 = vld [vmem:[#allocation6 + $0x60] ss:$16 sps:$4 sm:$0xff]   ;;  %313 = vmatpush1.bf16.msra.mxu1 %v2115_v32  ;;  %v2118_v36 = vld [vmem:[#allocation6 + $0x28] ss:$16 sps:$4 sm:$0xff]  }
  0x50   :  { %v2077_v10 = vld [vmem:[#allocation6 + $0x84] ss:$16 sps:$4 sm:$0xff]   ;;  %v2079_v11 = vld [vmem:[#allocation6 + $0x80] ss:$16 sps:$4 sm:$0xff]   ;;  %314 = vmatprep.subr.bf16.mxu1 %v2116_v33  ;;  %v2119_v37 = vld [vmem:[#allocation6 + $0x4c] ss:$16 sps:$4 sm:$0xff]  }
  0x51   :  { %v2080_v12 = vld [vmem:[#allocation6 + $0xa4] ss:$16 sps:$4 sm:$0xff]   ;;  %v2082_v13 = vld [vmem:[#allocation6 + $0xa0] ss:$16 sps:$4 sm:$0xff]   ;;  %v2121_v39 = vld [vmem:[#allocation6 + $0x48] ss:$16 sps:$4 sm:$0xff]  }
  0x52   :  { %272 = vmatpush1.bf16.msra.mxu0 %v2070_v4  ;;  %v2083_v14 = vld [vmem:[#allocation6 + $0xc4] ss:$16 sps:$4 sm:$0xff]   ;;  %v2085_v15 = vld [vmem:[#allocation6 + $0xc0] ss:$16 sps:$4 sm:$0xff]   ;;  %v2122_v40 = vld [vmem:[#allocation6 + $0x6c] ss:$16 sps:$4 sm:$0xff]  }
  0x53   :  { %273 = vmatprep.subr.bf16.mxu0 %v2071_v5  ;;  %v2086_v16 = vld [vmem:[#allocation6 + $0xe4] ss:$16 sps:$4 sm:$0xff]   ;;  %v2088_v17 = vld [vmem:[#allocation6 + $0xe0] ss:$16 sps:$4 sm:$0xff]   ;;  %315 = vmatpush1.bf16.msra.mxu1 %v2118_v36  ;;  %v2124_v43 = vld [vmem:[#allocation6 + $0x68] ss:$16 sps:$4 sm:$0xff]  }
  0x54   :  { %v2089_v20 = vld [vmem:[#allocation8] sm:$0xff]   ;;  %316 = vmatprep.subr.bf16.mxu1 %v2119_v37  ;;  %v2125_v44 = vld [vmem:[#allocation6 + $0x8c] ss:$16 sps:$4 sm:$0xff]   ;;  %v2127_v46 = vld [vmem:[#allocation6 + $0x88] ss:$16 sps:$4 sm:$0xff]   ;;  %vm758_vm1 = vcmask 1043456  }
  0x55   :  { %v2128_v47 = vld [vmem:[#allocation6 + $0xac] ss:$16 sps:$4 sm:$0xff]   ;;  %v2130_v50 = vld [vmem:[#allocation6 + $0xa8] ss:$16 sps:$4 sm:$0xff]   ;;  %v2091_v63 = vld [vmem:[#allocation8 + $0x10] sm:$0xff]   ;;  %vm742_vm2 = vcmask 64512  }
  0x56   :  { %274 = vmatpush1.bf16.msra.mxu0 %v2073_v7  ;;  %v2131_v51 = vld [vmem:[#allocation6 + $0xcc] ss:$16 sps:$4 sm:$0xff]   ;;  %v2133_v53 = vld [vmem:[#allocation6 + $0xc8] ss:$16 sps:$4 sm:$0xff]   ;;  %v2093_v4 = vld [vmem:[#allocation8 + $0x20] sm:$0xff]   ;;  %s2308_s3 = smov [#allocation11]  }
  0x57   :  { %275 = vmatprep.subr.bf16.mxu0 %v2074_v8  ;;  %317 = vmatpush1.bf16.msra.mxu1 %v2121_v39  ;;  %v2134_v54 = vld [vmem:[#allocation6 + $0xec] ss:$16 sps:$4 sm:$0xff]   ;;  %v2136_v57 = vld [vmem:[#allocation6 + $0xe8] ss:$16 sps:$4 sm:$0xff]   ;;  %v2105_v37 = vld [vmem:[#allocation8] sm:$0xff]   ;;  %s1639_s15 = sshll.u32 %s2308_s3, 4  ;;  %s1640_s15 = int_to_ptr.vmem [resolvable:$true] %s1639_s15 }
  0x58   :  { %318 = vmatprep.subr.bf16.mxu1 %v2122_v40  ;;  %v2090_v61 = vld [vmem:[#allocation8 + $0x8] sm:$0xff]   ;;  %v2092_v2 = vld [vmem:[#allocation8 + $0x18] sm:$0xff]   ;;  %s2265_s16 = scalar_lea.vmem %s1640_s15, 256  ;;  %p2270_p5 = scmp.lt.s32.totalorder %s1640_s15, %s1640_s15 }
  0x59   :  { %v2094_v7 = vld [vmem:[#allocation8 + $0x28] sm:$0xff]   ;;  %p2266_p4 = scmp.ne.s32.totalorder %s1640_s15, %s2265_s16  ;;  %p2271_p6 = scmp.lt.s32.totalorder %s2265_s16, %s2265_s16 }
  0x5a   :  { %276 = vmatpush1.bf16.msra.mxu0 %v2076_v9  ;;  %v2095_v9 = vld [vmem:[#allocation8 + $0x30] sm:$0xff]  }
  0x5b   :  { %277 = vmatprep.subr.bf16.mxu0 %v2077_v10  ;;  %319 = vmatpush1.bf16.msra.mxu1 %v2124_v43  ;;  %v2108_v43 = vld [vmem:[#allocation8 + $0x18] sm:$0xff]   ;;  %p2272_p7 = por %p2271_p6, %p2270_p5 }
  0x5c   :  { %320 = vmatprep.subr.bf16.mxu1 %v2125_v44  ;;  %v2109_v44 = vld [vmem:[#allocation8 + $0x20] sm:$0xff]  }
  0x5d   :  { %p2273_p8 = pnand %p2272_p7, %p2266_p4 }
  0x5e   :  { %278 = vmatpush1.bf16.msra.mxu0 %v2079_v11 }
  0x5f   :  { %279 = vmatprep.subr.bf16.mxu0 %v2080_v12  ;;  %321 = vmatpush1.bf16.msra.mxu1 %v2127_v46  ;;  %v2096_v12 = vld [vmem:[#allocation8 + $0x38] sm:$0xff]   ;;  %v2111_v46 = vld [vmem:[#allocation8 + $0x30] sm:$0xff]  }
  0x60   :  { %322 = vmatprep.subr.bf16.mxu1 %v2128_v47  ;;  %v2112_v47 = vld [vmem:[#allocation8 + $0x38] sm:$0xff]  }
  0x62   :  { %280 = vmatpush1.bf16.msra.mxu0 %v2082_v13 }
  0x63   :  { %281 = vmatprep.subr.bf16.mxu0 %v2083_v14  ;;  %323 = vmatpush1.bf16.msra.mxu1 %v2130_v50  ;;  %v2097_v14 = vld [vmem:[#allocation8 + $0x40] sm:$0xff]   ;;  %v2138_v50 = vld [vmem:[#allocation8 + $0x48] sm:$0xff]  }
  0x64   :  { %324 = vmatprep.subr.bf16.mxu1 %v2131_v51  ;;  %v2139_v51 = vld [vmem:[#allocation8 + $0x50] sm:$0xff]  }
  0x66   :  { %282 = vmatpush1.bf16.msra.mxu0 %v2085_v15 }
  0x67   :  { %283 = vmatprep.subr.bf16.mxu0 %v2086_v16  ;;  %325 = vmatpush1.bf16.msra.mxu1 %v2133_v53  ;;  %v2141_v53 = vld [vmem:[#allocation8 + $0x60] sm:$0xff]  }
  0x68   :  { %326 = vmatprep.subr.bf16.mxu1 %v2134_v54  ;;  %v2142_v54 = vld [vmem:[#allocation8 + $0x68] sm:$0xff]  }
  0x6a   :  { %284 = vmatpush1.bf16.msra.mxu0 %v2088_v17  ;;  %v2098_v17 = vld [vmem:[#allocation8 + $0x48] sm:$0xff]  }
  0x6b   :  { %327 = vmatpush1.bf16.msra.mxu1 %v2136_v57 }
  0x6d   :  { %302 = vmatmul.mubr.bf16.vlgmr.msra.gmra.mrb[0].mxu0 %v2385_v19 }
  0x6e   :  { %1867 = vmatprep.mubr.bf16.mxu0 %v2089_v20  ;;  %345 = vmatmul.mubr.bf16.vlgmr.msra.gmra.mrb[0].mxu1 %v2385_v19  ;;  %v2099_v19 = vld [vmem:[#allocation8 + $0x50] sm:$0xff]  }
  0x89   :  { %906 = vxpose.xlu0.b32.start.end [1/1] (short) %v75_v18, 128 }
  0xcc   :  { %v371_v21 = vpop.trf.xlu0 }
  0xd0   :  { %v372_v22 = vpop.trf.xlu0 }
  0xd1   :  { %v387_v23 = vpack.c.bf16 %v372_v22, %v371_v21  ;;  %v2100_v22 = vld [vmem:[#allocation8 + $0x58] sm:$0xff]  }
  0xd3   :  { %1851 = vmatprep.subr.bf16.mxu0 %v387_v23 }
  0xd4   :  { %v373_v24 = vpop.trf.xlu0  ;;  %1852 = vmatpush3.bf16.msra.mxu0 %v387_v23 }
  0xd8   :  { %v374_v25 = vpop.trf.xlu0 }
  0xd9   :  { %v388_v26 = vpack.c.bf16 %v374_v25, %v373_v24  ;;  %v2101_v24 = vld [vmem:[#allocation8 + $0x60] sm:$0xff]  }
  0xdb   :  { %1853 = vmatprep.subr.bf16.mxu0 %v388_v26 }
  0xdc   :  { %v375_v27 = vpop.trf.xlu0  ;;  %1854 = vmatpush3.bf16.msra.mxu0 %v388_v26 }
  0xe0   :  { %v376_v28 = vpop.trf.xlu0 }
  0xe1   :  { %v389_v29 = vpack.c.bf16 %v376_v28, %v375_v27  ;;  %v2102_v27 = vld [vmem:[#allocation8 + $0x68] sm:$0xff]  }
  0xe3   :  { %1855 = vmatprep.subr.bf16.mxu0 %v389_v29 }
  0xe4   :  { %v377_v30 = vpop.trf.xlu0  ;;  %1856 = vmatpush3.bf16.msra.mxu0 %v389_v29  ;;  %v2103_v29 = vld [vmem:[#allocation8 + $0x70] sm:$0xff]  }
  0xe8   :  { %v378_v34 = vpop.trf.xlu0 }
  0xe9   :  { %v390_v35 = vpack.c.bf16 %v378_v34, %v377_v30  ;;  %v2104_v34 = vld [vmem:[#allocation8 + $0x78] sm:$0xff]  }
  0xeb   :  { %1857 = vmatprep.subr.bf16.mxu0 %v390_v35 }
  0xec   :  { %v379_v38 = vpop.trf.xlu0  ;;  %1858 = vmatpush3.bf16.msra.mxu0 %v390_v35 }
  0xf0   :  { %v380_v41 = vpop.trf.xlu0 }
  0xf1   :  { %v391_v42 = vpack.c.bf16 %v380_v41, %v379_v38  ;;  %v2106_v41 = vld [vmem:[#allocation8 + $0x8] sm:$0xff]  }
  0xf3   :  { %1859 = vmatprep.subr.bf16.mxu0 %v391_v42 }
  0xf4   :  { %v381_v45 = vpop.trf.xlu0  ;;  %1860 = vmatpush3.bf16.msra.mxu0 %v391_v42  ;;  %v2107_v42 = vld [vmem:[#allocation8 + $0x10] sm:$0xff]  }
  0xf8   :  { %v382_v48 = vpop.trf.xlu0 }
  0xf9   :  { %v392_v49 = vpack.c.bf16 %v382_v48, %v381_v45  ;;  %v2110_v45 = vld [vmem:[#allocation8 + $0x28] sm:$0xff]   ;;  %v2306_v48 = vmov 0.0  }
  0xfa   :  { %1899 = vmatprep.subr.bf16.mxu1 %v2306_v48  ;;  %1915 = vmatprep.mubr.msk.bf16.mxu1 %vm2307_vm0, %v2306_v48 }
  0xfb   :  { %1861 = vmatprep.subr.bf16.mxu0 %v392_v49 }
  0xfc   :  { %v383_v52 = vpop.trf.xlu0  ;;  %1862 = vmatpush3.bf16.msra.mxu0 %v392_v49  ;;  %v2137_v49 = vld [vmem:[#allocation8 + $0x40] sm:$0xff]  }
 0x100   :  { %v384_v55 = vpop.trf.xlu0 }
 0x101   :  { %v393_v56 = vpack.c.bf16 %v384_v55, %v383_v52  ;;  %v2140_v52 = vld [vmem:[#allocation8 + $0x58] sm:$0xff]   ;;  %v2143_v55 = vld [vmem:[#allocation8 + $0x70] sm:$0xff]  }
 0x103   :  { %1863 = vmatprep.subr.bf16.mxu0 %v393_v56 }
 0x104   :  { %v385_v58 = vpop.trf.xlu0  ;;  %1864 = vmatpush3.bf16.msra.mxu0 %v393_v56  ;;  %v2144_v56 = vld [vmem:[#allocation8 + $0x78] sm:$0xff]  }
 0x108   :  { %v386_v59 = vpop.trf.xlu0 }
 0x109   :  { %v394_v60 = vpack.c.bf16 %v386_v59, %v385_v58 }
 0x10b   :  { %1865 = vmatprep.subr.bf16.mxu0 %v394_v60 }
 0x10c   :  { %v922_v62 = vpop.trf.xlu0  ;;  %1866 = vmatpush3.bf16.msra.mxu0 %v394_v60 }
 0x10f   :  { %1868 = vmatmul.mubr.bf16.vlgmr.msra.gmra.mrb[4].mxu0 %v2090_v61 }
 0x110   :  { %v923_v0 = vpop.trf.xlu0  ;;  %1871 = vmatprep.mubr.bf16.mxu0 %v2091_v63 }
 0x111   :  { %v938_v1 = vpack.c.bf16 %v923_v0, %v922_v62 }
 0x113   :  { %1951 = vmatprep.subr.bf16.mxu0 %v938_v1 }
 0x114   :  { %v924_v3 = vpop.trf.xlu0  ;;  %1952 = vmatpush3.bf16.msra.mxu0 %v938_v1 }
 0x117   :  { %1872 = vmatmul.mubr.bf16.gmra.mrb[8].mxu0 %v2092_v2 }
 0x118   :  { %v925_v5 = vpop.trf.xlu0  ;;  %1875 = vmatprep.mubr.bf16.mxu0 %v2093_v4 }
 0x119   :  { %v939_v6 = vpack.c.bf16 %v925_v5, %v924_v3 }
 0x11b   :  { %1953 = vmatprep.subr.bf16.mxu0 %v939_v6 }
 0x11c   :  { %v926_v8 = vpop.trf.xlu0  ;;  %1954 = vmatpush3.bf16.msra.mxu0 %v939_v6 }
 0x11f   :  { %1876 = vmatmul.mubr.bf16.gmra.mrb[12].mxu0 %v2094_v7 }
 0x120   :  { %v927_v10 = vpop.trf.xlu0  ;;  %1879 = vmatprep.mubr.bf16.mxu0 %v2095_v9 }
 0x121   :  { %v940_v11 = vpack.c.bf16 %v927_v10, %v926_v8 }
 0x123   :  { %1955 = vmatprep.subr.bf16.mxu0 %v940_v11 }
 0x124   :  { %v928_v13 = vpop.trf.xlu0  ;;  %1956 = vmatpush3.bf16.msra.mxu0 %v940_v11 }
 0x127   :  { %1880 = vmatmul.mubr.bf16.gmra.mrb[16].mxu0 %v2096_v12 }
 0x128   :  { %v929_v15 = vpop.trf.xlu0  ;;  %1883 = vmatprep.mubr.bf16.mxu0 %v2097_v14 }
 0x129   :  { %v941_v16 = vpack.c.bf16 %v929_v15, %v928_v13 }
 0x12b   :  { %1957 = vmatprep.subr.bf16.mxu0 %v941_v16 }
 0x12c   :  { %v930_v18 = vpop.trf.xlu0  ;;  %1958 = vmatpush3.bf16.msra.mxu0 %v941_v16 }
 0x12f   :  { %1884 = vmatmul.mubr.bf16.gmra.mrb[20].mxu0 %v2098_v17 }
 0x130   :  { %v931_v20 = vpop.trf.xlu0  ;;  %1887 = vmatprep.mubr.bf16.mxu0 %v2099_v19 }
 0x131   :  { %v942_v21 = vpack.c.bf16 %v931_v20, %v930_v18 }
 0x133   :  { %1959 = vmatprep.subr.bf16.mxu0 %v942_v21 }
 0x134   :  { %v932_v23 = vpop.trf.xlu0  ;;  %1960 = vmatpush3.bf16.msra.mxu0 %v942_v21 }
 0x137   :  { %1888 = vmatmul.mubr.bf16.gmra.mrb[24].mxu0 %v2100_v22 }
 0x138   :  { %v933_v25 = vpop.trf.xlu0  ;;  %1891 = vmatprep.mubr.bf16.mxu0 %v2101_v24 }
 0x139   :  { %v943_v26 = vpack.c.bf16 %v933_v25, %v932_v23 }
 0x13b   :  { %1961 = vmatprep.subr.bf16.mxu0 %v943_v26 }
 0x13c   :  { %v934_v28 = vpop.trf.xlu0  ;;  %1962 = vmatpush3.bf16.msra.mxu0 %v943_v26 }
 0x13f   :  { %1892 = vmatmul.mubr.bf16.gmra.mrb[28].mxu0 %v2102_v27 }
 0x140   :  { %v935_v30 = vpop.trf.xlu0  ;;  %1895 = vmatprep.mubr.bf16.mxu0 %v2103_v29  ;;  %v2389_v32 = vpop.f32.mrb[0].mxu0 }
 0x141   :  { %v944_v31 = vpack.c.bf16 %v935_v30, %v934_v28  ;;  %v2391_v33 = vpop.f32.mrb[1].mxu0  ;;  %v346_v57 = vpop.f32.mrb[0].mxu1 }
 0x142   :  { %v2393_v35 = vpop.f32.mrb[2].mxu0  ;;  %v348_v58 = vpop.f32.mrb[1].mxu1  ;;  %v701_v27 = vpack.c.bf16 %v346_v57, %v346_v57 }
 0x143   :  { %1963 = vmatprep.subr.bf16.mxu0 %v944_v31  ;;  %v2395_v38 = vpop.f32.mrb[3].mxu0  ;;  %v805_v59 = vpack.c.bf16 %v348_v58, %v348_v58  ;;  %v350_v60 = vpop.f32.mrb[2].mxu1 }
 0x144   :  { %v936_v36 = vpop.trf.xlu0  ;;  %1964 = vmatpush3.bf16.msra.mxu0 %v944_v31  ;;  %v1252_v61 = vpack.c.bf16 %v350_v60, %v350_v60  ;;  %v352_v62 = vpop.f32.mrb[3].mxu1  ;;  %v700_v31 = vpack.c.bf16 %v2389_v32, %v2389_v32 }
 0x145   :  { %v2404_v63 = vsel %vm758_vm1, %v805_v59, 0  ;;  %v1357_v0 = vpack.c.bf16 %v352_v62, %v352_v62 }
 0x146   :  { %v2407_v1 = vsel %vm758_vm1, %v1252_v61, 0 }
 0x147   :  { %1896 = vmatmul.mubr.bf16.gmra.mrb[32].mxu0 %v2104_v34  ;;  %v2410_v3 = vsel %vm758_vm1, %v1357_v0, 0 }
 0x148   :  { %v937_v39 = vpop.trf.xlu0  ;;  %1967 = vmatprep.mubr.bf16.mxu0 %v2105_v37  ;;  %v760_v37 = vsel %vm758_vm1, %v701_v27, 0 }
 0x149   :  { %v945_v40 = vpack.c.bf16 %v937_v39, %v936_v36 }
 0x14b   :  { %1965 = vmatprep.subr.bf16.mxu0 %v945_v40 }
 0x14c   :  { %1966 = vmatpush3.bf16.msra.mxu0 %v945_v40 }
 0x14d   :  { %1999 = vmatprep.subr.bf16.mxu0 %v2306_v48 }
 0x14f   :  { %1968 = vmatmul.mubr.bf16.vlgmr.msra.gmra.mrb[36].mxu0 %v2106_v41 }
 0x150   :  { %1971 = vmatprep.mubr.bf16.mxu0 %v2107_v42 }
 0x157   :  { %1972 = vmatmul.mubr.bf16.gmra.mrb[40].mxu0 %v2108_v43 }
 0x158   :  { %1975 = vmatprep.mubr.bf16.mxu0 %v2109_v44 }
 0x15f   :  { %1976 = vmatmul.mubr.bf16.gmra.mrb[44].mxu0 %v2110_v45 }
 0x160   :  { %1979 = vmatprep.mubr.bf16.mxu0 %v2111_v46 }
 0x167   :  { %1980 = vmatmul.mubr.bf16.gmra.mrb[48].mxu0 %v2112_v47 }
 0x168   :  { %1983 = vmatprep.mubr.bf16.mxu0 %v2137_v49 }
 0x16f   :  { %1984 = vmatmul.mubr.bf16.gmra.mrb[52].mxu0 %v2138_v50 }
 0x170   :  { %1987 = vmatprep.mubr.bf16.mxu0 %v2139_v51 }
 0x177   :  { %1988 = vmatmul.mubr.bf16.gmra.mrb[56].mxu0 %v2140_v52 }
 0x178   :  { %1991 = vmatprep.mubr.bf16.mxu0 %v2141_v53 }
 0x17f   :  { %1992 = vmatmul.mubr.bf16.gmra.mrb[60].mxu0 %v2142_v54 }
 0x180   :  { %1995 = vmatprep.mubr.bf16.mxu0 %v2143_v55 }
 0x187   :  { %1996 = vmatmul.mubr.bf16.gmra.mrb[64].mxu0 %v2144_v56 }
 0x188   :  { %2015 = vmatprep.mubr.msk.bf16.mxu0 %vm2307_vm0, %v2306_v48 }
 0x1e2   :  { %v1869_v2 = vpop.f32.mrb[4].mxu0 }
 0x1e3   :  { %v557_v4 = vpop.f32.mrb[5].mxu0 }
 0x1e4   :  { %v1870_v5 = vpop.f32.mrb[6].mxu0 }
 0x1e5   :  { %v685_v6 = vpack.c.bf16 %v1870_v5, %v1869_v2  ;;  %v560_v7 = vpop.f32.mrb[7].mxu0 }
 0x1e6   :  { %v684_v8 = vpack.c.bf16 %v560_v7, %v557_v4 }
 0x1e8   :  { %1900 = vmatpush3.bf16.msra.mxu1 %v684_v8 }
 0x1e9   :  { %1901 = vmatprep.subr.bf16.mxu1 %v2306_v48 }
 0x1ea   :  { %v1873_v9 = vpop.f32.mrb[8].mxu0 }
 0x1eb   :  { %v573_v10 = vpop.f32.mrb[9].mxu0 }
 0x1ec   :  { %v1874_v11 = vpop.f32.mrb[10].mxu0  ;;  %1902 = vmatpush3.bf16.msra.mxu1 %v685_v6 }
 0x1ed   :  { %v687_v12 = vpack.c.bf16 %v1874_v11, %v1873_v9  ;;  %v576_v13 = vpop.f32.mrb[11].mxu0  ;;  %1903 = vmatprep.subr.bf16.mxu1 %v2306_v48 }
 0x1ee   :  { %v686_v14 = vpack.c.bf16 %v576_v13, %v573_v10 }
 0x1f0   :  { %1904 = vmatpush3.bf16.msra.mxu1 %v686_v14 }
 0x1f1   :  { %1905 = vmatprep.subr.bf16.mxu1 %v2306_v48 }
 0x1f2   :  { %v1877_v15 = vpop.f32.mrb[12].mxu0 }
 0x1f3   :  { %v589_v16 = vpop.f32.mrb[13].mxu0 }
 0x1f4   :  { %v1878_v17 = vpop.f32.mrb[14].mxu0  ;;  %1906 = vmatpush3.bf16.msra.mxu1 %v687_v12 }
 0x1f5   :  { %v689_v18 = vpack.c.bf16 %v1878_v17, %v1877_v15  ;;  %v592_v19 = vpop.f32.mrb[15].mxu0  ;;  %1907 = vmatprep.subr.bf16.mxu1 %v2306_v48 }
 0x1f6   :  { %v688_v20 = vpack.c.bf16 %v592_v19, %v589_v16 }
 0x1f8   :  { %1908 = vmatpush3.bf16.msra.mxu1 %v688_v20 }
 0x1f9   :  { %1909 = vmatprep.subr.bf16.mxu1 %v2306_v48 }
 0x1fa   :  { %v1881_v21 = vpop.f32.mrb[16].mxu0 }
 0x1fb   :  { %v605_v22 = vpop.f32.mrb[17].mxu0 }
 0x1fc   :  { %v1882_v23 = vpop.f32.mrb[18].mxu0  ;;  %1910 = vmatpush3.bf16.msra.mxu1 %v689_v18 }
 0x1fd   :  { %v691_v24 = vpack.c.bf16 %v1882_v23, %v1881_v21  ;;  %v608_v25 = vpop.f32.mrb[19].mxu0  ;;  %1911 = vmatprep.subr.bf16.mxu1 %v2306_v48  ;;  %v1251_v21 = vpack.c.bf16 %v2393_v35, %v2393_v35 }
 0x1fe   :  { %v690_v26 = vpack.c.bf16 %v608_v25, %v605_v22 }
 0x200   :  { %1912 = vmatpush3.bf16.msra.mxu1 %v690_v26 }
 0x201   :  { %1913 = vmatprep.subr.bf16.mxu1 %v2306_v48 }
 0x202   :  { %v2419_v28 = vpop.f32.mrb[20].mxu0 }
 0x203   :  { %v2421_v29 = vpop.f32.mrb[21].mxu0 }
 0x204   :  { %1914 = vmatpush3.bf16.msra.mxu1 %v691_v24  ;;  %v2423_v30 = vpop.f32.mrb[22].mxu0 }
 0x205   :  { %v693_v34 = vpack.c.bf16 %v2423_v30, %v2419_v28  ;;  %v2429_v36 = vpop.f32.mrb[23].mxu0  ;;  %1919 = vmatprep.subr.bf16.mxu1 %v2306_v48  ;;  %v804_v28 = vpack.c.bf16 %v2391_v33, %v2391_v33 }
 0x206   :  { %v692_v39 = vpack.c.bf16 %v2429_v36, %v2421_v29 }
 0x207   :  { %1916 = vmatmul.mubr.bf16.vlgmr.msra.gmra.mrb[4].mxu1 %v700_v31 }
 0x208   :  { %1920 = vmatpush3.bf16.msra.mxu1 %v760_v37  ;;  %1921 = vmatprep.mubr.msk.bf16.mxu1 %vm2307_vm0, %v2306_v48 }
 0x209   :  { %1925 = vmatprep.subr.bf16.mxu1 %v2306_v48 }
 0x20a   :  { %v2438_v32 = vpop.f32.mrb[24].mxu0 }
 0x20b   :  { %v2440_v40 = vpop.f32.mrb[25].mxu0 }
 0x20c   :  { %v2442_v41 = vpop.f32.mrb[26].mxu0 }
 0x20d   :  { %v695_v42 = vpack.c.bf16 %v2442_v41, %v2438_v32  ;;  %v2446_v43 = vpop.f32.mrb[27].mxu0 }
 0x20e   :  { %v694_v44 = vpack.c.bf16 %v2446_v43, %v2440_v40 }
 0x212   :  { %v2450_v45 = vpop.f32.mrb[28].mxu0 }
 0x213   :  { %v2452_v46 = vpop.f32.mrb[29].mxu0 }
 0x214   :  { %v2454_v47 = vpop.f32.mrb[30].mxu0 }
 0x215   :  { %v697_v49 = vpack.c.bf16 %v2454_v47, %v2450_v45  ;;  %v2458_v50 = vpop.f32.mrb[31].mxu0 }
 0x216   :  { %v696_v51 = vpack.c.bf16 %v2458_v50, %v2452_v46 }
 0x21a   :  { %v2462_v52 = vpop.f32.mrb[32].mxu0 }
 0x21b   :  { %v2464_v53 = vpop.f32.mrb[33].mxu0 }
 0x21c   :  { %v2466_v54 = vpop.f32.mrb[34].mxu0 }
 0x21d   :  { %v699_v55 = vpack.c.bf16 %v2466_v54, %v2462_v52  ;;  %v2470_v56 = vpop.f32.mrb[35].mxu0 }
 0x21e   :  { %v698_v57 = vpack.c.bf16 %v2470_v56, %v2464_v53 }
 0x222   :  { %v1969_v58 = vpop.f32.mrb[36].mxu0 }
 0x223   :  { %v1108_v59 = vpop.f32.mrb[37].mxu0 }
 0x224   :  { %v1970_v60 = vpop.f32.mrb[38].mxu0 }
 0x225   :  { %v1236_v61 = vpack.c.bf16 %v1970_v60, %v1969_v58  ;;  %v1111_v62 = vpop.f32.mrb[39].mxu0 }
 0x226   :  { %v1235_v0 = vpack.c.bf16 %v1111_v62, %v1108_v59 }
 0x228   :  { %2000 = vmatpush3.bf16.msra.mxu0 %v1235_v0 }
 0x229   :  { %2001 = vmatprep.subr.bf16.mxu0 %v2306_v48 }
 0x22a   :  { %v1973_v2 = vpop.f32.mrb[40].mxu0 }
 0x22b   :  { %v1124_v4 = vpop.f32.mrb[41].mxu0 }
 0x22c   :  { %v1974_v5 = vpop.f32.mrb[42].mxu0  ;;  %2002 = vmatpush3.bf16.msra.mxu0 %v1236_v61 }
 0x22d   :  { %v1238_v6 = vpack.c.bf16 %v1974_v5, %v1973_v2  ;;  %v1127_v7 = vpop.f32.mrb[43].mxu0  ;;  %2003 = vmatprep.subr.bf16.mxu0 %v2306_v48 }
 0x22e   :  { %v1237_v8 = vpack.c.bf16 %v1127_v7, %v1124_v4 }
 0x230   :  { %2004 = vmatpush3.bf16.msra.mxu0 %v1237_v8 }
 0x231   :  { %2005 = vmatprep.subr.bf16.mxu0 %v2306_v48 }
 0x232   :  { %v1977_v9 = vpop.f32.mrb[44].mxu0 }
 0x233   :  { %v1140_v10 = vpop.f32.mrb[45].mxu0 }
 0x234   :  { %v1978_v11 = vpop.f32.mrb[46].mxu0  ;;  %2006 = vmatpush3.bf16.msra.mxu0 %v1238_v6 }
 0x235   :  { %v1240_v12 = vpack.c.bf16 %v1978_v11, %v1977_v9  ;;  %v1143_v13 = vpop.f32.mrb[47].mxu0  ;;  %2007 = vmatprep.subr.bf16.mxu0 %v2306_v48 }
 0x236   :  { %v1239_v14 = vpack.c.bf16 %v1143_v13, %v1140_v10 }
 0x238   :  { %2008 = vmatpush3.bf16.msra.mxu0 %v1239_v14 }
 0x239   :  { %2009 = vmatprep.subr.bf16.mxu0 %v2306_v48 }
 0x23a   :  { %v1981_v15 = vpop.f32.mrb[48].mxu0 }
 0x23b   :  { %v1156_v16 = vpop.f32.mrb[49].mxu0 }
 0x23c   :  { %v1982_v17 = vpop.f32.mrb[50].mxu0  ;;  %2010 = vmatpush3.bf16.msra.mxu0 %v1240_v12 }
 0x23d   :  { %v1242_v18 = vpack.c.bf16 %v1982_v17, %v1981_v15  ;;  %v1159_v19 = vpop.f32.mrb[51].mxu0  ;;  %2011 = vmatprep.subr.bf16.mxu0 %v2306_v48 }
 0x23e   :  { %v1241_v20 = vpack.c.bf16 %v1159_v19, %v1156_v16 }
 0x240   :  { %2012 = vmatpush3.bf16.msra.mxu0 %v1241_v20 }
 0x241   :  { %2013 = vmatprep.subr.bf16.mxu0 %v2306_v48 }
 0x242   :  { %v2483_v22 = vpop.f32.mrb[52].mxu0 }
 0x243   :  { %v2485_v23 = vpop.f32.mrb[53].mxu0 }
 0x244   :  { %2014 = vmatpush3.bf16.msra.mxu0 %v1242_v18  ;;  %v2487_v24 = vpop.f32.mrb[54].mxu0 }
 0x245   :  { %v2491_v26 = vpop.f32.mrb[55].mxu0 }
 0x246   :  { %v1243_v27 = vpack.c.bf16 %v2491_v26, %v2485_v23 }
 0x247   :  { %2016 = vmatmul.mubr.bf16.vlgmr.msra.gmra.mrb[68].mxu0 %v1251_v21 }
 0x24a   :  { %v2495_v31 = vpop.f32.mrb[56].mxu0 }
 0x24b   :  { %v2497_v37 = vpop.f32.mrb[57].mxu0 }
 0x24c   :  { %v2499_v35 = vpop.f32.mrb[58].mxu0 }
 0x24d   :  { %v2503_v59 = vpop.f32.mrb[59].mxu0  ;;  %v2648_v23 = vpack.c.bf16 %v2499_v35, %v2495_v31  ;;  %v1356_v31 = vpack.c.bf16 %v2395_v38, %v2395_v38 }
 0x252   :  { %v2507_v61 = vpop.f32.mrb[60].mxu0 }
 0x253   :  { %v2509_v62 = vpop.f32.mrb[61].mxu0 }
 0x254   :  { %v2511_v0 = vpop.f32.mrb[62].mxu0 }
 0x255   :  { %v2515_v4 = vpop.f32.mrb[63].mxu0 }
 0x256   :  { %v2649_v26 = vpack.c.bf16 %v2515_v4, %v2509_v62 }
 0x25a   :  { %v2519_v6 = vpop.f32.mrb[64].mxu0 }
 0x25b   :  { %v2521_v7 = vpop.f32.mrb[65].mxu0 }
 0x25c   :  { %v2523_v8 = vpop.f32.mrb[66].mxu0 }
 0x25d   :  { %v2527_v10 = vpop.f32.mrb[67].mxu0 }
 0x2da   :  { %v736_v12 = vpop.f32.mrb[4].mxu1 }
 0x2db   :  { %v1917_v13 = vpop.f32.mrb[5].mxu1  ;;  %v743_v14 = vsel %vm742_vm2, %v736_v12, -inf }
 0x2dc   :  { %744 = vmax.xlane.f32.xlu1 %v743_v14  ;;  %v739_v15 = vpop.f32.mrb[6].mxu1 }
 0x2dd   :  { %v1918_v16 = vpop.f32.mrb[7].mxu1 }
 0x31a   :  { %v1287_v17 = vpop.f32.mrb[68].mxu0 }
 0x31b   :  { %v2017_v18 = vpop.f32.mrb[69].mxu0 }
 0x31c   :  { %v1290_v19 = vpop.f32.mrb[70].mxu0  ;;  %v2145_v18 = vld [vmem:[#allocation9 + $0x40] sm:$0xff]  }
 0x31d   :  { %v2018_v20 = vpop.f32.mrb[71].mxu0 }
 0x369   :  { %v745_v21 = vpop.xlane.xlu1 %744 }
 0x36a   :  { %v746_v2 = vsub.f32 %v736_v12, %v745_v21 }
 0x36c   :  { %v747_v9 = vmul.f32 1.442695, %v746_v2 }
 0x36e   :  { %2161 = vpow2.f32 %v747_v9 }
 0x378   :  { %v2162_v5 = vpop.eup %2161 }
 0x379   :  { %v749_v58 = vsel %vm742_vm2, %v2162_v5, 0.0 }
 0x37a   :  { %750 = vadd.xlane.f32.xlu1 %v749_v58 }
 0x407   :  { %v751_v11 = vpop.xlane.xlu1 %750 }
 0x408   :  { %2163 = vrcp.f32 %v751_v11 }
 0x412   :  { %v2164_v13 = vpop.eup %2163 }
 0x413   :  { %v753_v60 = vmul.f32 %v2164_v13, %v2162_v5  ;;  %v2647_v5 = vpack.c.bf16 %v2503_v59, %v2497_v37  ;;  %v2146_v13 = vld [vmem:[#allocation9] sm:$0xff]  }
 0x415   :  { %v754_v25 = vpack.c.bf16 %v753_v60, %v753_v60 }
 0x417   :  { %1922 = vmatmul.mubr.msk.bf16.vlgmr.msra.gmra.mrb[8].mxu1 %vm742_vm2, %v754_v25 }
 0x418   :  { %1926 = vmatpush3.bf16.msra.mxu1 %v692_v39  ;;  %1941 = vmatprep.mubr.msk.bf16.mxu1 %vm2307_vm0, %v2306_v48 }
 0x419   :  { %1927 = vmatprep.subr.bf16.mxu1 %v2306_v48 }
 0x41c   :  { %1928 = vmatpush3.bf16.msra.mxu1 %v693_v34 }
 0x41d   :  { %1929 = vmatprep.subr.bf16.mxu1 %v2306_v48 }
 0x420   :  { %1930 = vmatpush3.bf16.msra.mxu1 %v694_v44 }
 0x421   :  { %1931 = vmatprep.subr.bf16.mxu1 %v2306_v48 }
 0x424   :  { %1932 = vmatpush3.bf16.msra.mxu1 %v695_v42 }
 0x425   :  { %1933 = vmatprep.subr.bf16.mxu1 %v2306_v48 }
 0x428   :  { %1934 = vmatpush3.bf16.msra.mxu1 %v696_v51 }
 0x429   :  { %1935 = vmatprep.subr.bf16.mxu1 %v2306_v48 }
 0x42c   :  { %1936 = vmatpush3.bf16.msra.mxu1 %v697_v49 }
 0x42d   :  { %1937 = vmatprep.subr.bf16.mxu1 %v2306_v48 }
 0x430   :  { %1938 = vmatpush3.bf16.msra.mxu1 %v698_v57 }
 0x431   :  { %1939 = vmatprep.subr.bf16.mxu1 %v2306_v48 }
 0x434   :  { %1940 = vmatpush3.bf16.msra.mxu1 %v699_v55 }
 0x435   :  { %1945 = vmatprep.subr.bf16.mxu1 %v2306_v48 }
 0x437   :  { %1942 = vmatmul.mubr.bf16.vlgmr.msra.gmra.mrb[12].mxu1 %v804_v28 }
 0x438   :  { %1946 = vmatpush3.bf16.msra.mxu1 %v2404_v63  ;;  %1947 = vmatprep.mubr.msk.bf16.mxu1 %vm2307_vm0, %v2306_v48  ;;  %v1293_v63 = vsel %vm742_vm2, %v1287_v17, -inf }
 0x439   :  { %2019 = vmatprep.subr.bf16.mxu1 %v2306_v48 }
 0x4ea   :  { %v796_v29 = vpop.f32.mrb[8].mxu1 }
 0x4eb   :  { %v802_v30 = vpack.c.bf16 %v796_v29, %v796_v29  ;;  %v1923_v34 = vpop.f32.mrb[9].mxu1  ;;  %v2147_v29 = vld [vmem:[#allocation9 + $0x48] sm:$0xff]  }
 0x4ec   :  { %v799_v36 = vpop.f32.mrb[10].mxu1  ;;  %v2149_v34 = vld [vmem:[#allocation9 + $0x50] sm:$0xff]  }
 0x4ed   :  { %803 = vst [vmem:[#allocation2] sm:$0xf] %v802_v30  ;;  %v1924_v39 = vpop.f32.mrb[11].mxu1  ;;  %v2148_v30 = vld [vmem:[#allocation9 + $0x8] sm:$0xff]   ;;  %v2150_v36 = vld [vmem:[#allocation9 + $0x10] sm:$0xff]  }
 0x4ee   :  { %v2151_v39 = vld [vmem:[#allocation9 + $0x58] sm:$0xff]  }
 0x50a   :  { %v840_v32 = vpop.f32.mrb[12].mxu1 }
 0x50b   :  { %v1943_v40 = vpop.f32.mrb[13].mxu1  ;;  %v846_v33 = vsel %vm742_vm2, %v840_v32, -inf }
 0x50c   :  { %847 = vmax.xlane.f32.xlu1 %v846_v33  ;;  %v843_v41 = vpop.f32.mrb[14].mxu1  ;;  %v2153_v40 = vld [vmem:[#allocation9 + $0x60] sm:$0xff]  }
 0x50d   :  { %v1944_v42 = vpop.f32.mrb[15].mxu1  ;;  %v2154_v33 = vld [vmem:[#allocation9 + $0x20] sm:$0xff]   ;;  %v2155_v41 = vld [vmem:[#allocation9 + $0x68] sm:$0xff]  }
 0x50e   :  { %v2156_v42 = vld [vmem:[#allocation9 + $0x28] sm:$0xff]  }
 0x510   :  { %1294 = vmax.xlane.f32.xlu1 %v1293_v63  ;;  %v2157_v63 = vld [vmem:[#allocation9 + $0x70] sm:$0xff]  }
 0x599   :  { %v848_v43 = vpop.xlane.xlu1 %847 }
 0x59a   :  { %v849_v44 = vsub.f32 %v840_v32, %v848_v43  ;;  %v2152_v32 = vld [vmem:[#allocation9 + $0x18] sm:$0xff]   ;;  %v2158_v43 = vld [vmem:[#allocation9 + $0x30] sm:$0xff]  }
 0x59c   :  { %v850_v45 = vmul.f32 1.442695, %v849_v44  ;;  %v2159_v44 = vld [vmem:[#allocation9 + $0x78] sm:$0xff]  }
 0x59d   :  { %v1295_v46 = vpop.xlane.xlu1 %1294 }
 0x59e   :  { %2165 = vpow2.f32 %v850_v45  ;;  %v1296_v47 = vsub.f32 %v1287_v17, %v1295_v46  ;;  %v2160_v45 = vld [vmem:[#allocation9 + $0x38] sm:$0xff]  }
 0x5a0   :  { %v1297_v49 = vmul.f32 1.442695, %v1296_v47 }
 0x5a2   :  { %2167 = vpow2.f32 %v1297_v49 }
 0x5a8   :  { %v2166_v50 = vpop.eup %2165 }
 0x5a9   :  { %v852_v51 = vsel %vm742_vm2, %v2166_v50, 0.0 }
 0x5aa   :  { %853 = vadd.xlane.f32.xlu1 %v852_v51 }
 0x5ac   :  { %v2168_v52 = vpop.eup %2167 }
 0x5ad   :  { %v1299_v53 = vsel %vm742_vm2, %v2168_v52, 0.0 }
 0x5ae   :  { %1300 = vadd.xlane.f32.xlu1 %v1299_v53 }
 0x637   :  { %v854_v54 = vpop.xlane.xlu1 %853 }
 0x638   :  { %2169 = vrcp.f32 %v854_v54 }
 0x63b   :  { %v1301_v55 = vpop.xlane.xlu1 %1300 }
 0x63c   :  { %2171 = vrcp.f32 %v1301_v55 }
 0x642   :  { %v2170_v56 = vpop.eup %2169 }
 0x643   :  { %v856_v57 = vmul.f32 %v2170_v56, %v2166_v50 }
 0x645   :  { %v857_v25 = vpack.c.bf16 %v856_v57, %v856_v57 }
 0x646   :  { %v2172_v58 = vpop.eup %2171 }
 0x647   :  { %1948 = vmatmul.mubr.msk.bf16.vlgmr.msra.gmra.mrb[16].mxu1 %vm742_vm2, %v857_v25  ;;  %v1303_v60 = vmul.f32 %v2172_v58, %v2168_v52 }
 0x648   :  { %2020 = vmatpush3.bf16.msra.mxu1 %v2407_v1  ;;  %2021 = vmatprep.mubr.msk.bf16.mxu1 %vm2307_vm0, %v2306_v48  ;;  %v2646_v1 = vpack.c.bf16 %v2487_v24, %v2483_v22  ;;  %v2650_v22 = vpack.c.bf16 %v2511_v0, %v2507_v61  ;;  %v2651_v24 = vpack.c.bf16 %v2527_v10, %v2521_v7 }
 0x649   :  { %2025 = vmatprep.subr.bf16.mxu1 %v2306_v48  ;;  %v1304_v2 = vpack.c.bf16 %v1303_v60, %v1303_v60 }
 0x64f   :  { %2022 = vmatmul.mubr.msk.bf16.vlgmr.msra.gmra.mrb[20].mxu1 %vm742_vm2, %v1304_v2 }
 0x650   :  { %2026 = vmatpush3.bf16.msra.mxu1 %v1243_v27  ;;  %2041 = vmatprep.mubr.msk.bf16.mxu1 %vm2307_vm0, %v2306_v48  ;;  %v2652_v27 = vpack.c.bf16 %v2523_v8, %v2519_v6 }
 0x651   :  { %2027 = vmatprep.subr.bf16.mxu1 %v2306_v48 }
 0x654   :  { %2028 = vmatpush3.bf16.msra.mxu1 %v2646_v1 }
 0x655   :  { %2029 = vmatprep.subr.bf16.mxu1 %v2306_v48 }
 0x658   :  { %2030 = vmatpush3.bf16.msra.mxu1 %v2647_v5 }
 0x659   :  { %2031 = vmatprep.subr.bf16.mxu1 %v2306_v48 }
 0x65c   :  { %2032 = vmatpush3.bf16.msra.mxu1 %v2648_v23 }
 0x65d   :  { %2033 = vmatprep.subr.bf16.mxu1 %v2306_v48 }
 0x660   :  { %2034 = vmatpush3.bf16.msra.mxu1 %v2649_v26 }
 0x661   :  { %2035 = vmatprep.subr.bf16.mxu1 %v2306_v48 }
 0x664   :  { %2036 = vmatpush3.bf16.msra.mxu1 %v2650_v22 }
 0x665   :  { %2037 = vmatprep.subr.bf16.mxu1 %v2306_v48 }
 0x668   :  { %2038 = vmatpush3.bf16.msra.mxu1 %v2651_v24 }
 0x669   :  { %2039 = vmatprep.subr.bf16.mxu1 %v2306_v48 }
 0x66c   :  { %2040 = vmatpush3.bf16.msra.mxu1 %v2652_v27 }
 0x66d   :  { %2045 = vmatprep.subr.bf16.mxu1 %v2306_v48 }
 0x66f   :  { %2042 = vmatmul.mubr.bf16.vlgmr.msra.gmra.mrb[24].mxu1 %v1356_v31 }
 0x670   :  { %2046 = vmatpush3.bf16.msra.mxu1 %v2410_v3  ;;  %2047 = vmatprep.mubr.msk.bf16.mxu1 %vm2307_vm0, %v2306_v48 }
 0x671   :  { %1829 = vmatprep.subr.bf16.mxu1 %v2145_v18 }
 0x71a   :  { %v898_v37 = vpop.f32.mrb[16].mxu1 }
 0x71b   :  { %v904_v35 = vpack.c.bf16 %v898_v37, %v898_v37  ;;  %v1949_v59 = vpop.f32.mrb[17].mxu1 }
 0x71c   :  { %v901_v61 = vpop.f32.mrb[18].mxu1 }
 0x71d   :  { %905 = vst [vmem:[#allocation2 + $0x8] sm:$0xf] %v904_v35  ;;  %v1950_v62 = vpop.f32.mrb[19].mxu1 }
 0x722   :  { %v1345_v0 = vpop.f32.mrb[20].mxu1 }
 0x723   :  { %v1351_v4 = vpack.c.bf16 %v1345_v0, %v1345_v0  ;;  %v2023_v6 = vpop.f32.mrb[21].mxu1 }
 0x724   :  { %v1348_v7 = vpop.f32.mrb[22].mxu1 }
 0x725   :  { %v1353_v8 = vrot.slane %v1351_v4, 4  ;;  %v2024_v38 = vpop.f32.mrb[23].mxu1 }
 0x727   :  { %1355 = vst [vmem:[#allocation2] sm:$0xf0] %v1353_v8 }
 0x72e   :  { %v1461_v54 = vld [vmem:[#allocation2] sm:$0xff] }
 0x742   :  { %v1392_v9 = vpop.f32.mrb[24].mxu1 }
 0x743   :  { %v2043_v10 = vpop.f32.mrb[25].mxu1  ;;  %v1398_v3 = vsel %vm742_vm2, %v1392_v9, -inf }
 0x744   :  { %1399 = vmax.xlane.f32.xlu1 %v1398_v3  ;;  %v1395_v11 = vpop.f32.mrb[26].mxu1 }
 0x745   :  { %v2044_v48 = vpop.f32.mrb[27].mxu1 }
 0x7d1   :  { %v1400_v12 = vpop.xlane.xlu1 %1399 }
 0x7d2   :  { %v1401_v14 = vsub.f32 %v1392_v9, %v1400_v12 }
 0x7d4   :  { %v1402_v15 = vmul.f32 1.442695, %v1401_v14 }
 0x7d6   :  { %2173 = vpow2.f32 %v1402_v15 }
 0x7e0   :  { %v2174_v16 = vpop.eup %2173 }
 0x7e1   :  { %v1404_v17 = vsel %vm742_vm2, %v2174_v16, 0.0 }
 0x7e2   :  { %1405 = vadd.xlane.f32.xlu1 %v1404_v17 }
 0x86f   :  { %v1406_v19 = vpop.xlane.xlu1 %1405 }
 0x870   :  { %2175 = vrcp.f32 %v1406_v19 }
 0x87a   :  { %v2176_v20 = vpop.eup %2175 }
 0x87b   :  { %v1408_v21 = vmul.f32 %v2176_v20, %v2174_v16 }
 0x87d   :  { %v1409_v28 = vpack.c.bf16 %v1408_v21, %v1408_v21 }
 0x87f   :  { %2048 = vmatmul.mubr.msk.bf16.vlgmr.msra.gmra.mrb[28].mxu1 %vm742_vm2, %v1409_v28 }
 0x880   :  { %1830 = vmatpush3.bf16.msra.mxu1 %v2146_v13 }
 0x881   :  { %1831 = vmatprep.subr.bf16.mxu1 %v2147_v29 }
 0x884   :  { %1832 = vmatpush3.bf16.msra.mxu1 %v2148_v30 }
 0x885   :  { %1833 = vmatprep.subr.bf16.mxu1 %v2149_v34 }
 0x888   :  { %1834 = vmatpush3.bf16.msra.mxu1 %v2150_v36 }
 0x889   :  { %1835 = vmatprep.subr.bf16.mxu1 %v2151_v39 }
 0x88c   :  { %1836 = vmatpush3.bf16.msra.mxu1 %v2152_v32 }
 0x88d   :  { %1837 = vmatprep.subr.bf16.mxu1 %v2153_v40 }
 0x890   :  { %1838 = vmatpush3.bf16.msra.mxu1 %v2154_v33 }
 0x891   :  { %1839 = vmatprep.subr.bf16.mxu1 %v2155_v41 }
 0x894   :  { %1840 = vmatpush3.bf16.msra.mxu1 %v2156_v42 }
 0x895   :  { %1841 = vmatprep.subr.bf16.mxu1 %v2157_v63 }
 0x898   :  { %1842 = vmatpush3.bf16.msra.mxu1 %v2158_v43 }
 0x899   :  { %1843 = vmatprep.subr.bf16.mxu1 %v2159_v44 }
 0x89c   :  { %1844 = vmatpush3.bf16.msra.mxu1 %v2160_v45 }
 0x952   :  { %v1450_v46 = vpop.f32.mrb[28].mxu1 }
 0x953   :  { %v1456_v47 = vpack.c.bf16 %v1450_v46, %v1450_v46  ;;  %v2049_v49 = vpop.f32.mrb[29].mxu1 }
 0x954   :  { %v1453_v50 = vpop.f32.mrb[30].mxu1 }
 0x955   :  { %v1458_v51 = vrot.slane %v1456_v47, 4  ;;  %v2050_v52 = vpop.f32.mrb[31].mxu1 }
 0x957   :  { %1460 = vst [vmem:[#allocation2 + $0x8] sm:$0xf0] %v1458_v51 }
 0x95e   :  { %v1462_v53 = vld [vmem:[#allocation2 + $0x8] sm:$0xff] }
 0x95f   :  { %1623 = vmatprep.mubr.bf16.mxu1 %v1462_v53 }
 0x960   :  { %1624 = vmatmul.mubr.bf16.vlgmr.msra.gmra.mrb[32].mxu1 %v1461_v54 }
 0xa33   :  { %v1845_v55 = vpop.f32.mrb[32].mxu1 }
 0xa34   :  { %v1846_v56 = vpop.f32.mrb[33].mxu1 }
 0xa35   :  { %v1847_v57 = vadd.f32 %v1846_v56, %v1845_v55  ;;  %v1848_v25 = vpop.f32.mrb[34].mxu1 }
 0xa36   :  { %v1849_v58 = vpop.f32.mrb[35].mxu1 }
 0xa37   :  { %1632 = vst [vmem:[#allocation11] sm:$0xff] %v1847_v57  ;;  %v1850_v60 = vadd.f32 %v1849_v58, %v1848_v25 }
 0xa39   :  { %1633 = vst [vmem:[#allocation11 + $0x8] sm:$0xff] %v1850_v60 }
 0xa3a   :  { %2276 = shalt.err (!%p2273_p8)
}
 0xa3b   :  { %s2277_s19 = scalar_lea.hbm %s2645_s4, 256 }
 0xa3c   :  { %p2278_p9 = scmp.ne.s32.totalorder %s2645_s4, %s2277_s19  ;;  %p2281_p10 = scmp.lt.u32.totalorder %s2277_s19, %s2645_s4 }
 0xa3e   :  { %p2283_p11 = pnand %p2281_p10, %p2278_p9 }
 0xa40   :  { %2286 = shalt.err (!%p2283_p11)
}
 0xa41   :  { %1645 = dma.vmem_to_hbm [thread:$0]  %s1640_s15, 256, %s2645_s4, [#allocation5], %s2299_s1, %s2299_s1, %s2300_s13  }
 0xa42   :  { %2293 = dma.done.wait [#allocation5], 256  }
 0xa43   :  { %2294 = vsyncadd [#allocation5], 4294967040 }
 0xa44   :  { %1649 = vsyncpa [#allocation4], 1 }
 0xa45   :  { %1650 = vsyncpa [#allocation7], 1 }
 0xa46   :  { %1651 = vsyncpa [#allocation10], 1 }
 0xa47   :  { %1652 = vsyncpa [#allocation5], 1 }

</bundles_post_ra>
